<compile_context>
chip_gen: v7x
topology: tpu7x:2x2x1
jax: 0.10.0
libtpu: 0.0.40
codegen_flags: <defaults>
</compile_context>

<pallas_src>
import math

import jax
import jax.numpy as jnp
from jax.experimental import pallas as pl
from jax.experimental.pallas import tpu as pltpu

KERNEL_SIZE = 15
STRIDE = 10
PADDING = 3
LN_EPS = 1e-5


def _dsconv_kernel(x_ref, ab_ref, w_ref, mavg_ref, g_ref, bt_ref, o_ref):
    """One grid step: a group of flattened segments, fully lane-dense.

    x_ref   : (Mb, w_in)            bf16 grouped input rows, Mb = gb*(seg_rows+1)
    ab_ref  : (w_in, 2*fold*nin)    bf16 depthwise tap banks [A | B]
    w_ref   : (fold*nin, fold*nout) bf16 block-diagonal pointwise weight
    mavg_ref: (fold*nout, fold*nout)bf16 block-diagonal group-mean matrix
    g_ref   : (1, fold*nout)        f32 LayerNorm gamma tiled fold times
    bt_ref  : (1, fold*nout)        f32 LayerNorm beta tiled fold times
    o_ref   : (Mb, fold*nout)       output (fold timesteps per row)
    """
    fn = ab_ref.shape[1] // 2  # fold * nin

    # Depthwise conv: single bf16 MXU matmul (f32 accumulation) on the whole,
    # sublane-aligned block.
    r = jnp.dot(x_ref[...], ab_ref[...], preferred_element_type=jnp.float32)
    ra = r[:, :fn]            # taps of this row's frames landing in this row
    rb = r[:, fn:]            # taps of this row's frames landing in the row above
    # +1-row shift applied on the narrow 32-lane result; the wrapped last row
    # and per-segment seam rows only affect rows the wrapper slices off.
    rb_up = jnp.concatenate([rb[1:, :], rb[:1, :]], axis=0)
    h = jnp.maximum(ra + rb_up, 0.0)                       # ReLU

    # Pointwise 1x1 conv (block-diagonal -> output stays fold*nout = 128 lanes).
    y = jnp.dot(h.astype(jnp.bfloat16), w_ref[...],
                preferred_element_type=jnp.float32)
    y = jnp.maximum(y, 0.0)                                # ReLU

    # LayerNorm per nout-wide lane group via block-diagonal averaging matmuls
    # (bf16 operands, f32 accumulation, numerically-centered two-pass form).
    mavg = mavg_ref[...]
    mean = jnp.dot(y.astype(jnp.bfloat16), mavg,
                   preferred_element_type=jnp.float32)
    yc = y - mean
    var = jnp.dot((yc * yc).astype(jnp.bfloat16), mavg,
                  preferred_element_type=jnp.float32)
    yn = yc * jax.lax.rsqrt(var + LN_EPS)
    o_ref[...] = (yn * g_ref[...] + bt_ref[...]).astype(o_ref.dtype)


def _build_depthwise_mats(dw_w, fold):
    """Build the two sparse depthwise tap matrices for the grouped layout.

    dw_w: (K, nin).  Returns (A, B), each (fold*STRIDE*nin, fold*nin), with
    A[(f*nin+c), (j*nin+c)] = tap[f - j*STRIDE, c]                  (same row)
    B[(f*nin+c), (j*nin+c)] = tap[fold*STRIDE + f - j*STRIDE, c]    (next row)
    """
    K, nin = dw_w.shape
    f = jnp.arange(fold * STRIDE)
    j = jnp.arange(fold)
    eye = jnp.eye(nin, dtype=dw_w.dtype)

    def bank(offset):
        k = offset + f[:, None] - j[None, :] * STRIDE          # (fold*S, fold)
        valid = (k >= 0) & (k < K)
        taps = jnp.where(valid[:, :, None],
                         dw_w[jnp.clip(k, 0, K - 1)], 0.0)     # (fold*S, fold, nin)
        m = jnp.einsum("fjc,cd->fcjd", taps, eye)
        return m.reshape(fold * STRIDE * nin, fold * nin)

    return bank(0), bank(fold * STRIDE)


def dsconv_subsampling10(x, x_mask, dw_w, pw_w, gamma, beta, *,
                         max_seg_rows=511, target_m=512):
    """Pallas implementation of DepthwiseSeparableConv1dSubsampling10.forward.

    x      : (B, T, nin) float32
    x_mask : (B, 1, T) bool or None
    dw_w   : (K, nin)    (PyTorch depthwise weight (nin,1,K) transposed)
    pw_w   : (nin, nout) (PyTorch pointwise weight (nout,nin,1) transposed)
    gamma, beta : (nout,)
    Returns (y, mask') with y: (B, T_out, nout).
    """
    B, T, nin = x.shape
    nout = pw_w.shape[1]
    t_out = (T + 2 * PADDING - KERNEL_SIZE) // STRIDE + 1

    # Fold several timesteps into one 128-wide lane row when nout divides 128.
    fold = 128 // nout if (nout <= 128 and 128 % nout == 0) else 1
    rows_total = -(-t_out // fold)                 # ceil(t_out / fold)
    seg_rows = min(rows_total, max_seg_rows)       # row-tile size (VMEM bound)
    n_seg = -(-rows_total // seg_rows)
    rows_pad = n_seg * seg_rows
    unit = seg_rows + 1                            # rows per segment incl. halo
    w_in = fold * STRIDE * nin

    # Single padded copy; the stride-alignment regrouping reshape is free.
    frames = (rows_pad + 1) * fold * STRIDE
    x_pad = jnp.pad(x, ((0, 0), (PADDING, frames - PADDING - T), (0, 0)))
    x_rows = x_pad.reshape(B, rows_pad + 1, w_in)

    # Split each utterance into segments of seg_rows rows plus a 1-row halo.
    if n_seg == 1:
        x_seg = x_rows                                         # (B, unit, w_in)
    else:
        idx = (jnp.arange(n_seg)[:, None] * seg_rows
               + jnp.arange(unit)[None, :]).reshape(-1)
        x_seg = jnp.take(x_rows, idx, axis=1).reshape(B * n_seg, unit, w_in)

    # Pack whole segments per grid step so the matmul M dimension is filled.
    s_total = B * n_seg
    gb = max(1, target_m // unit)
    if gb >= s_total:
        gb = s_total                               # single step, block == array
    else:
        align = 16 // math.gcd(unit, 16)           # keep Mb sublane-aligned
        gb = min(-(-gb // align) * align, s_total)
    n_steps = -(-s_total // gb)
    s_pad = n_steps * gb
    if s_pad > s_total:
        x_seg = jnp.pad(x_seg, ((0, s_pad - s_total), (0, 0), (0, 0)))
    mb = gb * unit
    x_flat = x_seg.reshape(s_pad * unit, w_in).astype(jnp.bfloat16)

    # Weight preparation (bf16 MXU operands, built once in the wrapper).
    a_mat, b_mat = _build_depthwise_mats(dw_w.astype(jnp.float32), fold)
    ab = jnp.concatenate([a_mat, b_mat], axis=1).astype(jnp.bfloat16)
    w_blk = jnp.kron(jnp.eye(fold, dtype=jnp.float32),
                     pw_w.astype(jnp.float32)).astype(jnp.bfloat16)
    mavg = jnp.kron(jnp.eye(fold, dtype=jnp.float32),
                    jnp.full((nout, nout), 1.0 / nout, dtype=jnp.float32)
                    ).astype(jnp.bfloat16)
    g_t = jnp.tile(gamma.astype(jnp.float32), fold).reshape(1, fold * nout)
    b_t = jnp.tile(beta.astype(jnp.float32), fold).reshape(1, fold * nout)

    y_flat = pl.pallas_call(
        _dsconv_kernel,
        out_shape=jax.ShapeDtypeStruct((s_pad * unit, fold * nout), x.dtype),
        grid=(n_steps,),
        in_specs=[
            pl.BlockSpec((mb, w_in), lambda s: (s, 0)),                 # x rows
            pl.BlockSpec((w_in, 2 * fold * nin), lambda s: (0, 0)),     # [A|B]
            pl.BlockSpec((fold * nin, fold * nout), lambda s: (0, 0)),  # W blk
            pl.BlockSpec((fold * nout, fold * nout), lambda s: (0, 0)), # Mavg
            pl.BlockSpec((1, fold * nout), lambda s: (0, 0)),           # gamma
            pl.BlockSpec((1, fold * nout), lambda s: (0, 0)),           # beta
        ],
        out_specs=pl.BlockSpec((mb, fold * nout), lambda s: (s, 0)),
        compiler_params=pltpu.CompilerParams(
            dimension_semantics=("parallel",),
            vmem_limit_bytes=32 * 1024 * 1024),
    )(x_flat, ab, w_blk, mavg, g_t, b_t)

    # Drop halo/seam rows and padded tail timesteps; unfold the lane groups.
    y = y_flat.reshape(s_pad, unit, fold, nout)[:s_total, :seg_rows]
    y = y.reshape(B, rows_pad * fold, nout)[:, :t_out, :]

    if x_mask is None:
        return y, None
    # Mask subsampling exactly as the PyTorch module: x_mask[:, :, :-14:9].
    return y, x_mask[:, :, :-14:9]


def _reference(x, x_mask, dw_w, pw_w, gamma, beta):
    """Pure-JAX fp32 reference of the same forward pass."""
    B, T, nin = x.shape
    t_out = (T + 2 * PADDING - KERNEL_SIZE) // STRIDE + 1
    xp = jnp.pad(x, ((0, 0), (PADDING, PADDING), (0, 0)))
    windows = jnp.stack(
        [xp[:, k:k + (t_out - 1) * STRIDE + 1:STRIDE, :]
         for k in range(KERNEL_SIZE)], axis=2)                 # (B,T_out,K,nin)
    hp = jax.lax.Precision.HIGHEST
    dwout = jnp.einsum("btkc,kc->btc", windows, dw_w, precision=hp)
    h = jax.nn.relu(dwout)
    y = jax.nn.relu(jnp.einsum("btc,cd->btd", h, pw_w, precision=hp))
    mean = y.mean(-1, keepdims=True)
    var = ((y - mean) ** 2).mean(-1, keepdims=True)
    yn = (y - mean) / jnp.sqrt(var + LN_EPS) * gamma + beta
    mask_out = None if x_mask is None else x_mask[:, :, :-14:9]
    return yn, mask_out


if __name__ == "__main__":
    B, T, NIN, NOUT = 2, 100, 8, 32

    key = jax.random.PRNGKey(0)
    k_x, k_dw, k_pw = jax.random.split(key, 3)

    x = jax.random.normal(k_x, (B, T, NIN), dtype=jnp.float32)
    x_mask = jnp.ones((B, 1, T), dtype=jnp.bool_)

    # PyTorch depthwise weight (nin, 1, K) -> stored here as (K, nin).
    dw_w = 0.1 * jax.random.normal(k_dw, (KERNEL_SIZE, NIN), dtype=jnp.float32)
    # PyTorch pointwise weight (nout, nin, 1) -> stored here as (nin, nout).
    pw_w = 0.1 * jax.random.normal(k_pw, (NIN, NOUT), dtype=jnp.float32)
    # nn.LayerNorm default init.
    gamma = jnp.ones((NOUT,), dtype=jnp.float32)
    beta = jnp.zeros((NOUT,), dtype=jnp.float32)

    y, m = dsconv_subsampling10(x, x_mask, dw_w, pw_w, gamma, beta)
    y = jax.block_until_ready(y)
    m = jax.block_until_ready(m)

    y_ref, m_ref = _reference(x, x_mask, dw_w, pw_w, gamma, beta)
    assert y.shape == y_ref.shape, (y.shape, y_ref.shape)
    assert m.shape == m_ref.shape, (m.shape, m_ref.shape)
    # bf16 MXU operands on all three matmul stages (f32 accumulation) ->
    # slightly looser tolerance than a pure-fp32 comparison.
    assert jnp.allclose(y, y_ref, atol=5e-2, rtol=5e-2), "output mismatch"
    assert jnp.array_equal(m, m_ref), "mask mismatch"

    print("KERNEL_OK")
</pallas_src>

<mosaic_0001>
module attributes {stable_mosaic.version = 11 : i64} {
  func.func @_dsconv_kernel(%arg0: i32, %arg1: memref<8x320xbf16, #tpu.memory_space<vmem>>, %arg2: memref<320x64xbf16, #tpu.memory_space<vmem>>, %arg3: memref<32x128xbf16, #tpu.memory_space<vmem>>, %arg4: memref<128x128xbf16, #tpu.memory_space<vmem>>, %arg5: memref<1x128xf32, #tpu.memory_space<vmem>>, %arg6: memref<1x128xf32, #tpu.memory_space<vmem>>, %arg7: memref<8x128xf32, #tpu.memory_space<vmem>>) attributes {dimension_semantics = [#tpu.dimension_semantics<parallel>], iteration_bounds = array<i64: 1>, scalar_prefetch = 0 : i64, scratch_operands = 0 : i64, tpu.core_type = #tpu.core_type<tc>, window_params = [{transform_indices = @transform_0, window_bounds = array<i64: 8, 320>}, {pipeline_mode = #tpu.pipeline_mode<synchronous>, transform_indices = @transform_1, window_bounds = array<i64: 320, 64>}, {pipeline_mode = #tpu.pipeline_mode<synchronous>, transform_indices = @transform_2, window_bounds = array<i64: 32, 128>}, {pipeline_mode = #tpu.pipeline_mode<synchronous>, transform_indices = @transform_3, window_bounds = array<i64: 128, 128>}, {pipeline_mode = #tpu.pipeline_mode<synchronous>, transform_indices = @transform_4, window_bounds = array<i64: 1, 128>}, {pipeline_mode = #tpu.pipeline_mode<synchronous>, transform_indices = @transform_5, window_bounds = array<i64: 1, 128>}, {transform_indices = @transform_6, window_bounds = array<i64: 8, 128>}]} {
    %c0 = arith.constant 0 : index
    %c0_0 = arith.constant 0 : index
    %0 = vector.load %arg1[%c0, %c0_0] : memref<8x320xbf16, #tpu.memory_space<vmem>>, vector<8x320xbf16>
    %c0_1 = arith.constant 0 : index
    %c0_2 = arith.constant 0 : index
    %1 = vector.load %arg2[%c0_1, %c0_2] : memref<320x64xbf16, #tpu.memory_space<vmem>>, vector<320x64xbf16>
    %cst = arith.constant dense<0.000000e+00> : vector<8x64xf32>
    %2 = tpu.matmul %0, %1, %cst {dimension_numbers = #tpu.dot_dimension_numbers<[1], [0], [0], [1], [0, 0, 1, 1], [], []>} : vector<8x320xbf16>, vector<320x64xbf16>, vector<8x64xf32> -> vector<8x64xf32>
    %3 = vector.extract_strided_slice %2 {offsets = [0, 0], sizes = [8, 32], strides = [1, 1]} : vector<8x64xf32> to vector<8x32xf32>
    %4 = vector.extract_strided_slice %2 {offsets = [0, 32], sizes = [8, 32], strides = [1, 1]} : vector<8x64xf32> to vector<8x32xf32>
    %5 = vector.extract_strided_slice %4 {offsets = [1, 0], sizes = [7, 32], strides = [1, 1]} : vector<8x32xf32> to vector<7x32xf32>
    %6 = vector.extract_strided_slice %4 {offsets = [0, 0], sizes = [1, 32], strides = [1, 1]} : vector<8x32xf32> to vector<1x32xf32>
    %7 = tpu.concatenate %5, %6 in 0 : vector<7x32xf32>, vector<1x32xf32> -> vector<8x32xf32>
    %8 = arith.addf %3, %7 : vector<8x32xf32>
    %cst_3 = arith.constant 0.000000e+00 : f32
    %9 = vector.broadcast %cst_3 : f32 to vector<8x32xf32>
    %10 = arith.maximumf %8, %9 : vector<8x32xf32>
    %11 = arith.truncf %10 : vector<8x32xf32> to vector<8x32xbf16>
    %c0_4 = arith.constant 0 : index
    %c0_5 = arith.constant 0 : index
    %12 = vector.load %arg3[%c0_4, %c0_5] : memref<32x128xbf16, #tpu.memory_space<vmem>>, vector<32x128xbf16>
    %cst_6 = arith.constant dense<0.000000e+00> : vector<8x128xf32>
    %13 = tpu.matmul %11, %12, %cst_6 {dimension_numbers = #tpu.dot_dimension_numbers<[1], [0], [0], [1], [0, 0, 1, 1], [], []>} : vector<8x32xbf16>, vector<32x128xbf16>, vector<8x128xf32> -> vector<8x128xf32>
    %cst_7 = arith.constant 0.000000e+00 : f32
    %14 = vector.broadcast %cst_7 : f32 to vector<8x128xf32>
    %15 = arith.maximumf %13, %14 : vector<8x128xf32>
    %c0_8 = arith.constant 0 : index
    %c0_9 = arith.constant 0 : index
    %16 = vector.load %arg4[%c0_8, %c0_9] : memref<128x128xbf16, #tpu.memory_space<vmem>>, vector<128x128xbf16>
    %17 = arith.truncf %15 : vector<8x128xf32> to vector<8x128xbf16>
    %cst_10 = arith.constant dense<0.000000e+00> : vector<8x128xf32>
    %18 = tpu.matmul %17, %16, %cst_10 {dimension_numbers = #tpu.dot_dimension_numbers<[1], [0], [0], [1], [0, 0, 1, 1], [], []>} : vector<8x128xbf16>, vector<128x128xbf16>, vector<8x128xf32> -> vector<8x128xf32>
    %19 = arith.subf %15, %18 : vector<8x128xf32>
    %20 = arith.mulf %19, %19 : vector<8x128xf32>
    %21 = arith.truncf %20 : vector<8x128xf32> to vector<8x128xbf16>
    %cst_11 = arith.constant dense<0.000000e+00> : vector<8x128xf32>
    %22 = tpu.matmul %21, %16, %cst_11 {dimension_numbers = #tpu.dot_dimension_numbers<[1], [0], [0], [1], [0, 0, 1, 1], [], []>} : vector<8x128xbf16>, vector<128x128xbf16>, vector<8x128xf32> -> vector<8x128xf32>
    %cst_12 = arith.constant 9.99999974E-6 : f32
    %23 = vector.broadcast %cst_12 : f32 to vector<8x128xf32>
    %24 = arith.addf %22, %23 : vector<8x128xf32>
    %25 = math.rsqrt %24 : vector<8x128xf32>
    %26 = arith.mulf %19, %25 : vector<8x128xf32>
    %c0_13 = arith.constant 0 : index
    %c0_14 = arith.constant 0 : index
    %27 = vector.load %arg5[%c0_13, %c0_14] : memref<1x128xf32, #tpu.memory_space<vmem>>, vector<1x128xf32>
    %28 = vector.broadcast %27 : vector<1x128xf32> to vector<8x128xf32>
    %29 = arith.mulf %26, %28 : vector<8x128xf32>
    %c0_15 = arith.constant 0 : index
    %c0_16 = arith.constant 0 : index
    %30 = vector.load %arg6[%c0_15, %c0_16] : memref<1x128xf32, #tpu.memory_space<vmem>>, vector<1x128xf32>
    %31 = vector.broadcast %30 : vector<1x128xf32> to vector<8x128xf32>
    %32 = arith.addf %29, %31 : vector<8x128xf32>
    %c0_17 = arith.constant 0 : index
    %c0_18 = arith.constant 0 : index
    %33 = vector.load %arg7[%c0_17, %c0_18] : memref<8x128xf32, #tpu.memory_space<vmem>>, vector<8x128xf32>
    tpu.vector_store %arg7[%c0_17, %c0_18], %32 {strides = array<i32>} : memref<8x128xf32, #tpu.memory_space<vmem>>, vector<8x128xf32>,
    return
  }
  func.func @transform_0(%arg0: i32) -> (i32, i32) {
    %c0_i32 = arith.constant 0 : i32
    %c0_i32_0 = arith.constant 0 : i32
    return %arg0, %c0_i32 : i32, i32
  }
  func.func @transform_1(%arg0: i32) -> (i32, i32) {
    %c0_i32 = arith.constant 0 : i32
    %c0_i32_0 = arith.constant 0 : i32
    %c0_i32_1 = arith.constant 0 : i32
    return %c0_i32, %c0_i32_0 : i32, i32
  }
  func.func @transform_2(%arg0: i32) -> (i32, i32) {
    %c0_i32 = arith.constant 0 : i32
    %c0_i32_0 = arith.constant 0 : i32
    %c0_i32_1 = arith.constant 0 : i32
    return %c0_i32, %c0_i32_0 : i32, i32
  }
  func.func @transform_3(%arg0: i32) -> (i32, i32) {
    %c0_i32 = arith.constant 0 : i32
    %c0_i32_0 = arith.constant 0 : i32
    %c0_i32_1 = arith.constant 0 : i32
    return %c0_i32, %c0_i32_0 : i32, i32
  }
  func.func @transform_4(%arg0: i32) -> (i32, i32) {
    %c0_i32 = arith.constant 0 : i32
    %c0_i32_0 = arith.constant 0 : i32
    %c0_i32_1 = arith.constant 0 : i32
    return %c0_i32, %c0_i32_0 : i32, i32
  }
  func.func @transform_5(%arg0: i32) -> (i32, i32) {
    %c0_i32 = arith.constant 0 : i32
    %c0_i32_0 = arith.constant 0 : i32
    %c0_i32_1 = arith.constant 0 : i32
    return %c0_i32, %c0_i32_0 : i32, i32
  }
  func.func @transform_6(%arg0: i32) -> (i32, i32) {
    %c0_i32 = arith.constant 0 : i32
    %c0_i32_0 = arith.constant 0 : i32
    return %arg0, %c0_i32 : i32, i32
  }
}

</mosaic_0001>

<bundles_post_ra>
// kernel: tpu_custom_call.1
= control target key start
LH: loop header
LB: loop body
LE: loop exit
PB: predicated region body
PF: predicated region fallthrough
CT: control target
= control target key end

     0   :  { %v743_v2 = vmov 0.0   ;;  %vm744_vm0 = vmmov 0   ;;  %vm197_vm1 = vcmask 523264   ;;  %s926_s0 = inlined_call_operand.vmem [shape: bf16[8,320], index: 0, kind: input, shape index: {}]   ;;  %s927_s1 = inlined_call_operand.vmem [shape: bf16[320,64], index: 1, kind: input, shape index: {}]   ;;  %s928_s2 = inlined_call_operand.vmem [shape: bf16[32,128], index: 2, kind: input, shape index: {}]   ;;  %s929_s3 = inlined_call_operand.vmem [shape: bf16[128,128], index: 3, kind: input, shape index: {}]   ;;  %s930_s4 = inlined_call_operand.vmem [shape: f32[1,128], index: 4, kind: input, shape index: {}]   ;;  %s931_s5 = inlined_call_operand.vmem [shape: f32[1,128], index: 5, kind: input, shape index: {}]   ;;  %s932_s6 = inlined_call_operand.hbm [shape: f32[8,128], index: 6, kind: output, shape index: {}]  }
   0x1   :  { %v684_v0 = vld [vmem:[%s927_s1 + $0x40] sm:$0xff]   ;;  %620 = vmatprep.subr.bf16.mxu1 %v743_v2  ;;  %v686_v3 = vld [vmem:[%s927_s1 + $0x48] sm:$0xff]   ;;  %628 = vmatprep.mubr.msk.bf16.mxu1 %vm744_vm0, %v743_v2  ;;  %v688_v5 = vld [vmem:[%s927_s1 + $0x50] sm:$0xff]  }
   0x2   :  { %v685_v1 = vld [vmem:[%s927_s1] sm:$0xff]   ;;  %572 = vmatprep.subr.bf16.mxu0 %v684_v0  ;;  %v687_v4 = vld [vmem:[%s927_s1 + $0x8] sm:$0xff]   ;;  %v689_v6 = vld [vmem:[%s927_s1 + $0x10] sm:$0xff]  }
   0x3   :  { %573 = vmatpush3.bf16.msra.mxu0 %v685_v1  ;;  %v690_v7 = vld [vmem:[%s927_s1 + $0x58] sm:$0xff]   ;;  %v694_v8 = vld [vmem:[%s927_s1 + $0x80] sm:$0xff]   ;;  %v697_v11 = vld [vmem:[%s927_s1 + $0x88] sm:$0xff]  }
   0x4   :  { %574 = vmatprep.subr.bf16.mxu0 %v686_v3  ;;  %v691_v9 = vld [vmem:[%s927_s1 + $0x18] sm:$0xff]   ;;  %v692_v10 = vld [vmem:[%s927_s1 + $0x60] sm:$0xff]   ;;  %621 = vmatpush3.bf16.msra.mxu1 %v694_v8  ;;  %v695_v13 = vld [vmem:[%s927_s1 + $0x68] sm:$0xff]  }
   0x5   :  { %622 = vmatprep.subr.bf16.mxu1 %v743_v2  ;;  %v693_v12 = vld [vmem:[%s927_s1 + $0x20] sm:$0xff]   ;;  %v700_v14 = vld [vmem:[%s927_s1 + $0x90] sm:$0xff]   ;;  %v696_v15 = vld [vmem:[%s927_s1 + $0x28] sm:$0xff]  }
   0x6   :  { %v698_v16 = vld [vmem:[%s927_s1 + $0x70] sm:$0xff]   ;;  %v703_v17 = vld [vmem:[%s927_s1 + $0x98] sm:$0xff]   ;;  %v25_v18 = vld [vmem:[%s926_s0] sm:$0xff] }
   0x7   :  { %575 = vmatpush3.bf16.msra.mxu0 %v687_v4  ;;  %v699_v19 = vld [vmem:[%s927_s1 + $0x30] sm:$0xff]   ;;  %v536_v20 = vcombine.high %v25_v18, %v25_v18  ;;  %v706_v21 = vld [vmem:[%s926_s0 + $0x8] ss:$0 sps:$4 sm:$0xff]   ;;  %v701_v22 = vld [vmem:[%s927_s1 + $0x78] sm:$0xff]  }
   0x8   :  { %576 = vmatprep.subr.bf16.mxu0 %v688_v5  ;;  %623 = vmatpush3.bf16.msra.mxu1 %v697_v11  ;;  %v702_v23 = vld [vmem:[%s927_s1 + $0x38] sm:$0xff]  }
   0x9   :  { %624 = vmatprep.subr.bf16.mxu1 %v743_v2  ;;  %233 = vmatprep.mubr.bf16.mxu0 %v536_v20 }
   0xb   :  { %577 = vmatpush3.bf16.msra.mxu0 %v689_v6 }
   0xc   :  { %578 = vmatprep.subr.bf16.mxu0 %v690_v7  ;;  %625 = vmatpush3.bf16.msra.mxu1 %v700_v14 }
   0xd   :  { %626 = vmatprep.subr.bf16.mxu1 %v743_v2 }
   0xf   :  { %579 = vmatpush3.bf16.msra.mxu0 %v691_v9 }
  0x10   :  { %580 = vmatprep.subr.bf16.mxu0 %v692_v10  ;;  %627 = vmatpush3.bf16.msra.mxu1 %v703_v17 }
  0x11   :  { %632 = vmatprep.subr.bf16.mxu1 %v743_v2 }
  0x13   :  { %581 = vmatpush3.bf16.msra.mxu0 %v693_v12  ;;  %629 = vmatmul.mubr.msk.bf16.vlgmr.msra.gmra.mrb[0].mxu1 %vm197_vm1, %v706_v21 }
  0x14   :  { %582 = vmatprep.subr.bf16.mxu0 %v695_v13 }
  0x17   :  { %583 = vmatpush3.bf16.msra.mxu0 %v696_v15 }
  0x18   :  { %584 = vmatprep.subr.bf16.mxu0 %v698_v16 }
  0x1b   :  { %585 = vmatpush3.bf16.msra.mxu0 %v699_v19 }
  0x1c   :  { %11 = vsyncpa [#allocation3], 0  ;;  %586 = vmatprep.subr.bf16.mxu0 %v701_v22  ;;  %636 = vmatprep.mubr.msk.bf16.mxu1 %vm744_vm0, %v743_v2  ;;  %v535_v24 = vcombine.low %v25_v18, %v25_v18  ;;  %v707_v25 = vld [vmem:[%s928_s2] sm:$0xff]   ;;  %v708_v30 = vld [vmem:[%s928_s2 + $0x8] sm:$0xff]   ;;  %s745_s2 = smov 96   ;;  %vm309_vm2 = vcmask 261120  }
  0x1d   :  { %633 = vmatpush3.bf16.msra.mxu1 %v707_v25  ;;  %v709_v33 = vld [vmem:[%s929_s3] sm:$0xff]   ;;  %v710_v38 = vld [vmem:[%s929_s3 + $0x8] sm:$0xff]   ;;  %v711_v40 = vld [vmem:[%s929_s3 + $0x10] sm:$0xff]   ;;  %s746_s14 = smov [#allocation2]  }
  0x1e   :  { %634 = vmatprep.subr.bf16.mxu1 %v743_v2  ;;  %v712_v41 = vld [vmem:[%s929_s3 + $0x18] sm:$0xff]   ;;  %v713_v42 = vld [vmem:[%s929_s3 + $0x20] sm:$0xff]   ;;  %v714_v43 = vld [vmem:[%s929_s3 + $0x28] sm:$0xff]   ;;  %s527_s15 = sshll.u32 %s746_s14, 4  ;;  %s528_s15 = int_to_ptr.vmem [resolvable:$true] %s527_s15 }
  0x1f   :  { %587 = vmatpush3.bf16.msra.mxu0 %v702_v23  ;;  %v715_v44 = vld [vmem:[%s929_s3 + $0x30] sm:$0xff]   ;;  %v716_v49 = vld [vmem:[%s929_s3 + $0x38] sm:$0xff]   ;;  %v570_v5 = vld [vmem:[%s930_s4] ss:$0 sm:$0xff]  ;;  %s719_s16 = scalar_lea.vmem %s528_s15, 128  ;;  %p724_p1 = scmp.lt.s32.totalorder %s528_s15, %s528_s15 }
  0x20   :  { %660 = vmatprep.subr.bf16.mxu0 %v743_v2  ;;  %v571_v7 = vld [vmem:[%s931_s5] ss:$0 sm:$0xff]  ;;  %p720_p0 = scmp.ne.s32.totalorder %s528_s15, %s719_s16  ;;  %p725_p2 = scmp.lt.s32.totalorder %s719_s16, %s719_s16 }
  0x21   :  { %635 = vmatpush3.bf16.msra.mxu1 %v708_v30 }
  0x22   :  { %234 = vmatmul.mubr.bf16.vlgmr.msra.gmra.mrb[0].mxu0 %v535_v24  ;;  %640 = vmatprep.subr.bf16.mxu1 %v743_v2  ;;  %p726_p3 = por %p725_p2, %p724_p1 }
  0x23   :  { %676 = vmatprep.mubr.msk.bf16.mxu0 %vm744_vm0, %v743_v2  ;;  %661 = vmatpush3.bf16.msra.mxu0 %v709_v33 }
  0x24   :  { %662 = vmatprep.subr.bf16.mxu0 %v743_v2  ;;  %p727_p4 = pnand %p726_p3, %p720_p0 }
  0x27   :  { %663 = vmatpush3.bf16.msra.mxu0 %v710_v38 }
  0x28   :  { %664 = vmatprep.subr.bf16.mxu0 %v743_v2 }
  0x2b   :  { %665 = vmatpush3.bf16.msra.mxu0 %v711_v40 }
  0x2c   :  { %666 = vmatprep.subr.bf16.mxu0 %v743_v2 }
  0x2f   :  { %667 = vmatpush3.bf16.msra.mxu0 %v712_v41 }
  0x30   :  { %668 = vmatprep.subr.bf16.mxu0 %v743_v2 }
  0x33   :  { %669 = vmatpush3.bf16.msra.mxu0 %v713_v42 }
  0x34   :  { %670 = vmatprep.subr.bf16.mxu0 %v743_v2 }
  0x37   :  { %671 = vmatpush3.bf16.msra.mxu0 %v714_v43 }
  0x38   :  { %672 = vmatprep.subr.bf16.mxu0 %v743_v2 }
  0x3b   :  { %673 = vmatpush3.bf16.msra.mxu0 %v715_v44 }
  0x3c   :  { %674 = vmatprep.subr.bf16.mxu0 %v743_v2 }
  0x3f   :  { %675 = vmatpush3.bf16.msra.mxu0 %v716_v49 }
  0xe6   :  { %v275_v26 = vpop.f32.mrb[0].mxu1 }
  0xe7   :  { %v630_v27 = vpop.f32.mrb[1].mxu1 }
  0xe8   :  { %v278_v28 = vpop.f32.mrb[2].mxu1 }
  0xe9   :  { %v631_v29 = vpop.f32.mrb[3].mxu1 }
  0xf5   :  { %v588_v31 = vpop.f32.mrb[0].mxu0 }
  0xf6   :  { %v589_v32 = vpop.f32.mrb[1].mxu0 }
  0xf7   :  { %v590_v34 = vadd.f32 %v589_v32, %v588_v31  ;;  %v591_v35 = vpop.f32.mrb[2].mxu0 }
  0xf8   :  { %v592_v36 = vpop.f32.mrb[3].mxu0 }
  0xf9   :  { %v276_v37 = vadd.f32 %v590_v34, %v275_v26 }
  0xfb   :  { %v282_v39 = vrot.slane %v276_v37, 1 }
  0xfd   :  { %287 = vrot.lane.b32.xlu0 %v282_v39, %s745_s2 }
 0x16f   :  { %v288_v45 = vpop.permute.xlu0 %287 }
 0x170   :  { %v290_v46 = vadd.f32 %v288_v45, %v276_v37 }
 0x172   :  { %v291_v47 = vmax.f32 %v290_v46, 0.0 }
 0x174   :  { %v292_v48 = vpack.c.bf16 %v291_v47, %v291_v47 }
 0x176   :  { %637 = vmatmul.mubr.msk.bf16.vlgmr.msra.gmra.mrb[4].mxu1 %vm309_vm2, %v292_v48 }
 0x177   :  { %641 = vmatpush3.bf16.msra.mxu1 %v709_v33  ;;  %656 = vmatprep.mubr.msk.bf16.mxu1 %vm744_vm0, %v743_v2 }
 0x178   :  { %642 = vmatprep.subr.bf16.mxu1 %v743_v2 }
 0x17b   :  { %643 = vmatpush3.bf16.msra.mxu1 %v710_v38 }
 0x17c   :  { %644 = vmatprep.subr.bf16.mxu1 %v743_v2 }
 0x17f   :  { %645 = vmatpush3.bf16.msra.mxu1 %v711_v40 }
 0x180   :  { %646 = vmatprep.subr.bf16.mxu1 %v743_v2 }
 0x183   :  { %647 = vmatpush3.bf16.msra.mxu1 %v712_v41 }
 0x184   :  { %648 = vmatprep.subr.bf16.mxu1 %v743_v2 }
 0x187   :  { %649 = vmatpush3.bf16.msra.mxu1 %v713_v42 }
 0x188   :  { %650 = vmatprep.subr.bf16.mxu1 %v743_v2 }
 0x18b   :  { %651 = vmatpush3.bf16.msra.mxu1 %v714_v43 }
 0x18c   :  { %652 = vmatprep.subr.bf16.mxu1 %v743_v2 }
 0x18f   :  { %653 = vmatpush3.bf16.msra.mxu1 %v715_v44 }
 0x190   :  { %654 = vmatprep.subr.bf16.mxu1 %v743_v2 }
 0x193   :  { %655 = vmatpush3.bf16.msra.mxu1 %v716_v49 }
 0x249   :  { %v347_v50 = vpop.f32.mrb[4].mxu1 }
 0x24a   :  { %v353_v51 = vmax.f32 %v347_v50, 0.0  ;;  %v638_v52 = vpop.f32.mrb[5].mxu1 }
 0x24b   :  { %v350_v53 = vpop.f32.mrb[6].mxu1 }
 0x24c   :  { %v370_v54 = vpack.c.bf16 %v353_v51, %v353_v51  ;;  %v639_v55 = vpop.f32.mrb[7].mxu1 }
 0x24e   :  { %657 = vmatmul.mubr.bf16.vlgmr.msra.gmra.mrb[8].mxu1 %v370_v54 }
 0x321   :  { %v453_v56 = vpop.f32.mrb[8].mxu1 }
 0x322   :  { %v459_v57 = vsub.f32 %v353_v51, %v453_v56  ;;  %v658_v58 = vpop.f32.mrb[9].mxu1 }
 0x323   :  { %v456_v59 = vpop.f32.mrb[10].mxu1 }
 0x324   :  { %v460_v60 = vmul.f32 %v459_v57, %v459_v57  ;;  %v659_v61 = vpop.f32.mrb[11].mxu1 }
 0x326   :  { %v461_v62 = vpack.c.bf16 %v460_v60, %v460_v60 }
 0x328   :  { %677 = vmatmul.mubr.bf16.vlgmr.msra.gmra.mrb[4].mxu0 %v461_v62 }
 0x3fb   :  { %v496_v63 = vpop.f32.mrb[4].mxu0 }
 0x3fc   :  { %v497_v0 = vadd.f32 1e-05, %v496_v63  ;;  %v678_v1 = vpop.f32.mrb[5].mxu0 }
 0x3fd   :  { %v499_v2 = vpop.f32.mrb[6].mxu0 }
 0x3fe   :  { %717 = vrsqrt.f32 %v497_v0  ;;  %v679_v3 = vpop.f32.mrb[7].mxu0 }
 0x408   :  { %v718_v4 = vpop.eup %717 }
 0x409   :  { %v503_v6 = vmul.f32 %v718_v4, %v459_v57 }
 0x40b   :  { %v511_v8 = vmul.f32 %v570_v5, %v503_v6 }
 0x40d   :  { %v519_v9 = vadd.f32 %v571_v7, %v511_v8 }
 0x40f   :  { %520 = vst [vmem:[#allocation2] sm:$0xff] %v519_v9 }
 0x410   :  { %730 = shalt.err (!%p727_p4)
}
 0x411   :  { %s731_s17 = scalar_lea.hbm %s932_s6, 128 }
 0x412   :  { %p732_p5 = scmp.ne.s32.totalorder %s932_s6, %s731_s17  ;;  %p735_p6 = scmp.lt.u32.totalorder %s731_s17, %s932_s6 }
 0x414   :  { %p737_p7 = pnand %p735_p6, %p732_p5 }
 0x416   :  { %740 = shalt.err (!%p737_p7)
}
 0x417   :  { %530 = dma.vmem_to_hbm [thread:$0]  %s528_s15, 128, %s932_s6, [#allocation3]  }
 0x418   :  { %741 = dma.done.wait [#allocation3], 128  }
 0x419   :  { %742 = vsyncadd [#allocation3], 4294967168 }
 0x41a   :  { %534 = vsyncpa [#allocation3], 1 }

</bundles_post_ra>
